<compile_context>
chip_gen: v7x
topology: tpu7x:2x2x1
jax: 0.10.0
libtpu: 0.0.40
codegen_flags: <defaults>
</compile_context>

<pallas_src>
import functools

import jax
import jax.numpy as jnp
from jax.experimental import pallas as pl
from jax.experimental.pallas import tpu as pltpu


def _round_up(x: int, m: int) -> int:
    return ((x + m - 1) // m) * m


def _ls_nll_kernel(x_ref, tgt_ref, out_ref, m_acc, l_acc, wx_acc, *,
                   smoothing: float, k_total: int, mask_lanes: bool):
    """One (row-tile, k-tile) step.

    x_ref:   (BM, BK) logits (native dtype), tgt_ref: (BM, 1) int32,
    out_ref: (BM, 1) f32 per-row loss (resident across the K grid axis),
    scratch: running max / sum-exp / fused weighted-sum, each (BM, 1) f32.
    """
    confidence = 1.0 - smoothing
    smooth_k = smoothing / float(k_total)
    j = pl.program_id(1)
    nk = pl.num_programs(1)

    @pl.when(j == 0)
    def _init():
        m_acc[...] = jnp.full_like(m_acc, -jnp.inf)
        l_acc[...] = jnp.zeros_like(l_acc)
        wx_acc[...] = jnp.zeros_like(wx_acc)

    x = x_ref[...].astype(jnp.float32)            # (BM, BK) math in f32
    bm, bk = x.shape
    tgt = tgt_ref[...]                            # (BM, 1) int32

    # Lane-only class index within this tile (BK/128 vregs, not BM*BK/1024);
    # broadcast against per-row scalars shifted by the tile offset.
    lane = jax.lax.broadcasted_iota(jnp.int32, (1, bk), 1)
    onehot = lane == (tgt - j * bk)               # (BM, BK) via broadcast

    if mask_lanes:
        # Only reached when K % block_k != 0; only the last K tile has padded lanes.
        lane_valid = lane < (k_total - j * bk)    # (1, BK)
        x_max_src = jnp.where(lane_valid, x, -jnp.inf)
        x_sum_src = jnp.where(lane_valid, x, 0.0)
    else:
        x_max_src = x
        x_sum_src = x

    # Online log-sum-exp accumulation across K tiles.
    m_prev = m_acc[...]
    m_new = jnp.maximum(m_prev, jnp.max(x_max_src, axis=-1, keepdims=True))
    alpha = jnp.exp(m_prev - m_new)
    p = jnp.exp(x_max_src - m_new)
    l_acc[...] = alpha * l_acc[...] + jnp.sum(p, axis=-1, keepdims=True)
    m_acc[...] = m_new

    # Fused weighted sum (one reduce): conf * x[target] + (smoothing/K) * sum(x).
    w = jnp.where(onehot, confidence + smooth_k, smooth_k)
    wx_acc[...] = wx_acc[...] + jnp.sum(w * x_sum_src, axis=-1, keepdims=True)

    @pl.when(j == nk - 1)
    def _finalize():
        lse = m_acc[...] + jnp.log(l_acc[...])    # (BM, 1)
        # per_row = conf*(lse - x[t]) + smooth*(lse - sum(x)/K) = lse - wx
        out_ref[...] = lse - wx_acc[...]


def _default_block_k(k: int) -> int:
    """Pick a lane-dense class tile; prefer a multiple-of-128 divisor (mask-free)."""
    if k <= 8192:
        return k                                   # single K tile, never masked
    block_k = 4096                                 # fallback: last tile masked
    if k % 128 == 0:
        d = k // 128
        divisors = [128 * f for f in range(1, min(d, 32) + 1) if d % f == 0]
        if divisors and max(divisors) >= 512:
            block_k = max(divisors)                # largest mask-free tile <= 4096
    return block_k


def label_smoothing_nll(x: jax.Array, target: jax.Array, smoothing: float = 0.1,
                        *, block_m: int | None = None,
                        block_k: int | None = None) -> jax.Array:
    """x: (N, K) logits (any float dtype), target: (N,) int labels. Scalar f32 loss."""
    assert smoothing < 1.0
    n, k = x.shape
    itemsize = jnp.dtype(x.dtype).itemsize
    # Sublane multiple for the row-tile: 8 for 4B dtypes, 16 for 2B, 32 for 1B.
    sub = max(8, 32 // max(itemsize, 1))

    # --- tile selection -------------------------------------------------------
    if block_k is None:
        block_k = _default_block_k(k)
    if block_k != k:
        assert block_k % 128 == 0, "class tile must be a multiple of 128 (or full K)"

    budget = 8 * 1024 * 1024                       # bytes of logits per block
    if block_m is None:
        block_m = budget // (block_k * itemsize)
        block_m = max(sub, min(1024, (block_m // sub) * sub))
        # Keep >= 2 row tiles so both v7x TensorCores get work on the parallel axis.
        block_m = min(block_m, max(sub, _round_up(pl.cdiv(n, 2), sub)))
    block_m = min(block_m, _round_up(n, sub))
    if block_m != n:
        assert block_m % sub == 0

    num_m = pl.cdiv(n, block_m)
    num_k = pl.cdiv(k, block_k)
    mask_lanes = (k % block_k) != 0                # statically elide the lane mask

    tgt2d = target.astype(jnp.int32).reshape(n, 1)

    kernel = functools.partial(_ls_nll_kernel, smoothing=float(smoothing),
                               k_total=k, mask_lanes=mask_lanes)

    cost = pl.CostEstimate(
        flops=int(5 * n * k),
        transcendentals=int(n * k),
        bytes_accessed=int(n * k * itemsize + n * 4 + n * 4),
    )

    # Explicit scoped-VMEM limit: 2 double-buffered logits blocks + scratch + headroom
    # (v5e's default scoped limit is only 16 MiB; v7x physical VMEM is 64 MiB).
    logits_block_bytes = block_m * block_k * itemsize
    vmem_limit = int(max(32 * 1024 * 1024, 2 * logits_block_bytes + (2 << 20)))

    per_row = pl.pallas_call(
        kernel,
        out_shape=jax.ShapeDtypeStruct((n, 1), jnp.float32),
        grid=(num_m, num_k),
        in_specs=[
            pl.BlockSpec((block_m, block_k), lambda i, j: (i, j)),   # logits tile
            pl.BlockSpec((block_m, 1), lambda i, j: (i, 0)),         # targets tile
        ],
        # Output block is resident across the K axis (written on the last K step).
        out_specs=pl.BlockSpec((block_m, 1), lambda i, j: (i, 0)),
        scratch_shapes=[pltpu.VMEM((block_m, 1), jnp.float32)] * 3,  # m, l, wx
        compiler_params=pltpu.CompilerParams(
            dimension_semantics=("parallel", "arbitrary"),
            vmem_limit_bytes=vmem_limit),
        cost_estimate=cost,
    )(x, tgt2d)

    # Global mean over the true N (padded rows were never stored).
    return jnp.sum(per_row) / jnp.float32(n)


def _reference(x, target, smoothing=0.1):
    logprobs = jax.nn.log_softmax(x.astype(jnp.float32), axis=-1)
    nll = -jnp.take_along_axis(logprobs, target[:, None].astype(jnp.int32), axis=-1)[:, 0]
    smooth = -jnp.mean(logprobs, axis=-1)
    return jnp.mean((1.0 - smoothing) * nll + smoothing * smooth)


if __name__ == "__main__":
    key = jax.random.PRNGKey(0)

    # (N, K, dtype, block_m, block_k) -- small shapes exercising each code path:
    checks = [
        (20, 32, jnp.float32, 8, None),    # full-K tile, row tiling + partial last row tile
        (32, 256, jnp.bfloat16, 16, 128),  # native bf16, K tiling, mask statically elided
        (16, 160, jnp.float32, 8, 128),    # K tiling with padded class lanes (mask path)
        (24, 640, jnp.float32, None, None),  # default tile picker (>=2 row tiles)
    ]
    for idx, (n, k, dt, bm, bk) in enumerate(checks):
        kx, kt, key = jax.random.split(key, 3)
        x = jax.random.normal(kx, (n, k), dtype=jnp.float32).astype(dt)
        target = jax.random.randint(kt, (n,), 0, k, dtype=jnp.int32)

        loss = label_smoothing_nll(x, target, smoothing=0.1, block_m=bm, block_k=bk)
        loss = jax.block_until_ready(loss)

        ref = _reference(x, target, smoothing=0.1)
        assert jnp.allclose(loss, ref, atol=1e-4, rtol=1e-4), (idx, loss, ref)

    print("KERNEL_OK")
</pallas_src>

<mosaic_0001>
module attributes {stable_mosaic.version = 11 : i64} {
  func.func @_ls_nll_kernel(%arg0: i32, %arg1: i32, %arg2: memref<8x32xf32, #tpu.memory_space<vmem>>, %arg3: memref<8x1xi32, #tpu.memory_space<vmem>>, %arg4: memref<8x1xf32, #tpu.memory_space<vmem>>, %arg5: memref<8x1xf32, #tpu.memory_space<vmem>>, %arg6: memref<8x1xf32, #tpu.memory_space<vmem>>, %arg7: memref<8x1xf32, #tpu.memory_space<vmem>>) attributes {dimension_semantics = [#tpu.dimension_semantics<parallel>, #tpu.dimension_semantics<arbitrary>], iteration_bounds = array<i64: 3, 1>, scalar_prefetch = 0 : i64, scratch_operands = 3 : i64, tpu.core_type = #tpu.core_type<tc>, window_params = [{transform_indices = @transform_0, window_bounds = array<i64: 8, 32>}, {transform_indices = @transform_1, window_bounds = array<i64: 8, 1>}, {transform_indices = @transform_2, window_bounds = array<i64: 8, 1>}]} {
    %c0_i32 = arith.constant 0 : i32
    %0 = arith.cmpi eq, %arg1, %c0_i32 : i32
    %1 = arith.extui %0 : i1 to i32
    %c0_i32_0 = arith.constant 0 : i32
    %2 = arith.cmpi ne, %1, %c0_i32_0 : i32
    scf.if %2 {
      %cst_22 = arith.constant 0xFF800000 : f32
      %40 = vector.broadcast %cst_22 : f32 to vector<8x1xf32>
      %c0_23 = arith.constant 0 : index
      %c0_24 = arith.constant 0 : index
      %41 = vector.load %arg5[%c0_23, %c0_24] : memref<8x1xf32, #tpu.memory_space<vmem>>, vector<8x1xf32>
      tpu.vector_store %arg5[%c0_23, %c0_24], %40 {strides = array<i32>} : memref<8x1xf32, #tpu.memory_space<vmem>>, vector<8x1xf32>,
      %cst_25 = arith.constant 0.000000e+00 : f32
      %42 = vector.broadcast %cst_25 : f32 to vector<8x1xf32>
      %c0_26 = arith.constant 0 : index
      %c0_27 = arith.constant 0 : index
      %43 = vector.load %arg6[%c0_26, %c0_27] : memref<8x1xf32, #tpu.memory_space<vmem>>, vector<8x1xf32>
      tpu.vector_store %arg6[%c0_26, %c0_27], %42 {strides = array<i32>} : memref<8x1xf32, #tpu.memory_space<vmem>>, vector<8x1xf32>,
      %cst_28 = arith.constant 0.000000e+00 : f32
      %44 = vector.broadcast %cst_28 : f32 to vector<8x1xf32>
      %c0_29 = arith.constant 0 : index
      %c0_30 = arith.constant 0 : index
      %45 = vector.load %arg7[%c0_29, %c0_30] : memref<8x1xf32, #tpu.memory_space<vmem>>, vector<8x1xf32>
      tpu.vector_store %arg7[%c0_29, %c0_30], %44 {strides = array<i32>} : memref<8x1xf32, #tpu.memory_space<vmem>>, vector<8x1xf32>,
    } else {
    }
    %c0 = arith.constant 0 : index
    %c0_1 = arith.constant 0 : index
    %3 = vector.load %arg2[%c0, %c0_1] : memref<8x32xf32, #tpu.memory_space<vmem>>, vector<8x32xf32>
    %c0_2 = arith.constant 0 : index
    %c0_3 = arith.constant 0 : index
    %4 = vector.load %arg3[%c0_2, %c0_3] : memref<8x1xi32, #tpu.memory_space<vmem>>, vector<8x1xi32>
    %5 = tpu.iota {dimensions = array<i32: 1>} : vector<1x32xi32>
    %c32_i32 = arith.constant 32 : i32
    %6 = arith.muli %arg1, %c32_i32 : i32
    %7 = vector.broadcast %6 : i32 to vector<8x1xi32>
    %8 = arith.subi %4, %7 : vector<8x1xi32>
    %9 = vector.broadcast %5 : vector<1x32xi32> to vector<8x32xi32>
    %10 = vector.broadcast %8 : vector<8x1xi32> to vector<8x32xi32>
    %11 = arith.cmpi eq, %9, %10 : vector<8x32xi32>
    %c0_4 = arith.constant 0 : index
    %c0_5 = arith.constant 0 : index
    %12 = vector.load %arg5[%c0_4, %c0_5] : memref<8x1xf32, #tpu.memory_space<vmem>>, vector<8x1xf32>
    %cst = arith.constant dense<0xFF800000> : vector<8xf32>
    %13 = vector.multi_reduction <maximumf>, %3, %cst [1] : vector<8x32xf32> to vector<8xf32>
    %14 = vector.shape_cast %13 : vector<8xf32> to vector<8x1xf32>
    %15 = arith.maximumf %12, %14 : vector<8x1xf32>
    %16 = arith.subf %12, %15 : vector<8x1xf32>
    %17 = math.exp %16 : vector<8x1xf32>
    %18 = vector.broadcast %15 : vector<8x1xf32> to vector<8x32xf32>
    %19 = arith.subf %3, %18 : vector<8x32xf32>
    %20 = math.exp %19 : vector<8x32xf32>
    %c0_6 = arith.constant 0 : index
    %c0_7 = arith.constant 0 : index
    %21 = vector.load %arg6[%c0_6, %c0_7] : memref<8x1xf32, #tpu.memory_space<vmem>>, vector<8x1xf32>
    %22 = arith.mulf %17, %21 : vector<8x1xf32>
    %cst_8 = arith.constant dense<0.000000e+00> : vector<8xf32>
    %23 = vector.multi_reduction <add>, %20, %cst_8 [1] : vector<8x32xf32> to vector<8xf32>
    %24 = vector.shape_cast %23 : vector<8xf32> to vector<8x1xf32>
    %25 = arith.addf %22, %24 : vector<8x1xf32>
    %c0_9 = arith.constant 0 : index
    %c0_10 = arith.constant 0 : index
    %26 = vector.load %arg6[%c0_9, %c0_10] : memref<8x1xf32, #tpu.memory_space<vmem>>, vector<8x1xf32>
    tpu.vector_store %arg6[%c0_9, %c0_10], %25 {strides = array<i32>} : memref<8x1xf32, #tpu.memory_space<vmem>>, vector<8x1xf32>,
    %c0_11 = arith.constant 0 : index
    %c0_12 = arith.constant 0 : index
    %27 = vector.load %arg5[%c0_11, %c0_12] : memref<8x1xf32, #tpu.memory_space<vmem>>, vector<8x1xf32>
    tpu.vector_store %arg5[%c0_11, %c0_12], %15 {strides = array<i32>} : memref<8x1xf32, #tpu.memory_space<vmem>>, vector<8x1xf32>,
    %cst_13 = arith.constant 0.903124988 : f32
    %cst_14 = arith.constant 3.125000e-03 : f32
    %28 = vector.broadcast %cst_13 : f32 to vector<8x32xf32>
    %29 = vector.broadcast %cst_14 : f32 to vector<8x32xf32>
    %30 = arith.select %11, %28, %29 : vector<8x32xi1>, vector<8x32xf32>
    %c0_15 = arith.constant 0 : index
    %c0_16 = arith.constant 0 : index
    %31 = vector.load %arg7[%c0_15, %c0_16] : memref<8x1xf32, #tpu.memory_space<vmem>>, vector<8x1xf32>
    %32 = arith.mulf %30, %3 : vector<8x32xf32>
    %cst_17 = arith.constant dense<0.000000e+00> : vector<8xf32>
    %33 = vector.multi_reduction <add>, %32, %cst_17 [1] : vector<8x32xf32> to vector<8xf32>
    %34 = vector.shape_cast %33 : vector<8xf32> to vector<8x1xf32>
    %35 = arith.addf %31, %34 : vector<8x1xf32>
    %c0_18 = arith.constant 0 : index
    %c0_19 = arith.constant 0 : index
    %36 = vector.load %arg7[%c0_18, %c0_19] : memref<8x1xf32, #tpu.memory_space<vmem>>, vector<8x1xf32>
    tpu.vector_store %arg7[%c0_18, %c0_19], %35 {strides = array<i32>} : memref<8x1xf32, #tpu.memory_space<vmem>>, vector<8x1xf32>,
    %c0_i32_20 = arith.constant 0 : i32
    %37 = arith.cmpi eq, %arg1, %c0_i32_20 : i32
    %38 = arith.extui %37 : i1 to i32
    %c0_i32_21 = arith.constant 0 : i32
    %39 = arith.cmpi ne, %38, %c0_i32_21 : i32
    scf.if %39 {
      %c0_22 = arith.constant 0 : index
      %c0_23 = arith.constant 0 : index
      %40 = vector.load %arg5[%c0_22, %c0_23] : memref<8x1xf32, #tpu.memory_space<vmem>>, vector<8x1xf32>
      %c0_24 = arith.constant 0 : index
      %c0_25 = arith.constant 0 : index
      %41 = vector.load %arg6[%c0_24, %c0_25] : memref<8x1xf32, #tpu.memory_space<vmem>>, vector<8x1xf32>
      %42 = math.log %41 : vector<8x1xf32>
      %43 = arith.addf %40, %42 : vector<8x1xf32>
      %c0_26 = arith.constant 0 : index
      %c0_27 = arith.constant 0 : index
      %44 = vector.load %arg7[%c0_26, %c0_27] : memref<8x1xf32, #tpu.memory_space<vmem>>, vector<8x1xf32>
      %45 = arith.subf %43, %44 : vector<8x1xf32>
      %c0_28 = arith.constant 0 : index
      %c0_29 = arith.constant 0 : index
      %46 = vector.load %arg4[%c0_28, %c0_29] : memref<8x1xf32, #tpu.memory_space<vmem>>, vector<8x1xf32>
      tpu.vector_store %arg4[%c0_28, %c0_29], %45 {strides = array<i32>} : memref<8x1xf32, #tpu.memory_space<vmem>>, vector<8x1xf32>,
    } else {
    }
    return
  }
  func.func @transform_0(%arg0: i32, %arg1: i32) -> (i32, i32) {
    %c0_i32 = arith.constant 0 : i32
    return %arg0, %arg1 : i32, i32
  }
  func.func @transform_1(%arg0: i32, %arg1: i32) -> (i32, i32) {
    %c0_i32 = arith.constant 0 : i32
    %c0_i32_0 = arith.constant 0 : i32
    return %arg0, %c0_i32 : i32, i32
  }
  func.func @transform_2(%arg0: i32, %arg1: i32) -> (i32, i32) {
    %c0_i32 = arith.constant 0 : i32
    %c0_i32_0 = arith.constant 0 : i32
    return %arg0, %c0_i32 : i32, i32
  }
}

</mosaic_0001>

<bundles_post_ra>
// kernel: tpu_custom_call.1
= control target key start
LH: loop header
LB: loop body
LE: loop exit
PB: predicated region body
PF: predicated region fallthrough
CT: control target
= control target key end

     0   :  { %s408_s9 = smov 0   ;;  %s410_s10 = smov 0   ;;  %s459_s0 = inlined_call_operand.vmem [shape: f32[20,32], index: 0, kind: input, shape index: {}]   ;;  %s460_s1 = inlined_call_operand.vmem [shape: s32[20,1], index: 1, kind: input, shape index: {}]   ;;  %s461_s2 = inlined_call_operand.vmem [shape: f32[20,1], index: 2, kind: output, shape index: {}]  }
   0x1   :  { %s412_s11 = smov 0  }
   0x2 LB: > { %s24_s12 = sadd.s32 1, %s383_s10  ;;  %p323_p0 = scmp.ge.s32.totalorder %s387_s11, 1  ;;  %s387_s11 = sphi %s412_s11, %s12_s11   ;;  %s383_s10 = sphi %s410_s10, %s463_s10   ;;  %s379_s9 = sphi %s408_s9, %s462_s9  }
   0x3   : > { %p26_p1 = scmp.ge.s32.totalorder %s24_s12, 3  ;;  %p137_p2 = scmp.lt.s32.totalorder %s387_s11, 4 }
   0x5   : > { %s465_s12 = smov (%p26_p1, %s24_s12), 0  ;;  %p138_p3 = pnand %p323_p0, %p137_p2 }
   0x6   : > { %p164_p4 = scmp.lt.s32.totalorder (!%p138_p3), %s379_s9, 2  ;;  %vm183_vm0 = vcmask (!%p138_p3), 7168   ;;  %v389_v0 = vmov (!%p138_p3), -inf   ;;  %vm199_vm1 = vcmask (!%p138_p3), 261120   ;;  %v390_v3 = vmov (!%p138_p3), 0  }
   0x7   : > { %141 = sbr.rel (%p138_p3) target bundleno = 477 (0x1dd), region = 28  ;;  %184 = vst.msk [vmem:[#allocation2] sm:$0xff] (!%p138_p3), %vm183_vm0, %v389_v0  ;;  %357 = vset.pattern.permute.xlu0 (!%p138_p3), %v390_v3  ;;  %358 = vset.pattern.permute.xlu1 (!%p138_p3), %v390_v3  ;;  %v391_v4 = vmov (!%p138_p3), 0.0   ;;  %v189_v11 = vlaneseq (!%p138_p3)  ;;  %v392_v16 = vmov (!%p138_p3), 0.003125  }
   0x8   : > { %185 = vst.msk [vmem:[#allocation3] sm:$0xff] (!%p138_p3), %vm183_vm0, %v391_v4  ;;  %186 = vst.msk [vmem:[#allocation4] sm:$0xff] (!%p138_p3), %vm183_vm0, %v391_v4 }
   0x9   : > { %v190_v14 = vand.u32 (!%p138_p3), 127, %v189_v11 }
   0xe   : > { %s467_s9 = smov (!%p164_p4, %s379_s9), 2  ;;  %v198_v6 = vld [vmem:[#allocation2] sm:$0xff] }
   0xf   : > { %s427_s13 = sshll.u32 %s467_s9, 3  ;;  %v215_v24 = vld [vmem:[#allocation3] sm:$0xff]  ;;  %v225_v28 = vld [vmem:[#allocation4] sm:$0xff] }
  0x10   : > { %s170_s16 = scalar_lea.vmem %s459_s0, %s427_s13  ;;  %s174_s19 = scalar_lea.vmem %s460_s1, %s427_s13 }
  0x11   : > { %v187_v1 = vld [vmem:[%s170_s16] sm:$0xff]  ;;  %s178_s22 = scalar_lea.vmem %s461_s2, %s427_s13 }
  0x12   : > { %v200_v2 = vsel %vm199_vm1, %v187_v1, -inf  ;;  %v188_v5 = vld [vmem:[%s174_s19] sm:$0xff] }
  0x13   : > { %201 = vmax.xlane.f32.xlu0 %v200_v2  ;;  %195 = vperm.xlu1 %358, %v188_v5  }
  0x92   : > { %v196_v15 = vpop.permute.xlu1 %195 }
  0x93   : > { %vm197_vm2 = vcmp.eq.s32.totalorder %v190_v14, %v196_v15 }
  0x94   : > { %v224_v17 = vsel %vm197_vm2, 0.903125, %v392_v16 }
  0x95   : > { %v226_v18 = vmul.f32 %v224_v17, %v187_v1 }
  0x97   : > { %v227_v21 = vsel %vm199_vm1, %v226_v18, 0.0 }
  0xa0   : > { %v202_v7 = vpop.xlane.xlu0 %201 }
  0xa1   : > { %v203_v8 = vmax.f32 %v198_v6, %v202_v7 }
  0xa3   : > { %v204_v9 = vsub.f32 %v198_v6, %v203_v8  ;;  %223 = vst.msk [vmem:[#allocation2] sm:$0xff] %vm183_vm0, %v203_v8  ;;  %209 = vperm.xlu0 %357, %v203_v8  }
  0xa5   : > { %v205_v22 = vmul.f32 1.442695, %v204_v9 }
  0xaa   : > { %v235_v34 = vld [vmem:[#allocation2] sm:$0xff] }
 0x122   : > { %v210_v10 = vpop.permute.xlu0 %209 }
 0x123   : > { %v212_v12 = vsub.f32 %v187_v1, %v210_v10 }
 0x125   : > { %v213_v13 = vmul.f32 1.442695, %v212_v12 }
 0x127   : > { %359 = vpow2.f32 %v213_v13 }
 0x128   : > { %361 = vpow2.f32 %v205_v22 }
 0x131   : > { %v360_v19 = vpop.eup %359 }
 0x132   : > { %v217_v20 = vsel %vm199_vm1, %v360_v19, 0.0  ;;  %v362_v23 = vpop.eup %361 }
 0x133   : > { %218 = vadd.xlane.f32.xlu1 %v217_v20  ;;  %v216_v25 = vmul.f32 %v362_v23, %v215_v24 }
 0x137   : > { %228 = vadd.xlane.f32.xlu1 %v227_v21 }
 0x1c0   : > { %v219_v26 = vpop.xlane.xlu1 %218 }
 0x1c1   : > { %v220_v27 = vadd.f32 %v219_v26, %v216_v25 }
 0x1c3   : > { %222 = vst.msk [vmem:[#allocation3] sm:$0xff] %vm183_vm0, %v220_v27 }
 0x1c4   : > { %v229_v29 = vpop.xlane.xlu1 %228 }
 0x1c5   : > { %v230_v30 = vadd.f32 %v229_v29, %v225_v28 }
 0x1c7   : > { %231 = vst.msk [vmem:[#allocation4] sm:$0xff] %vm183_vm0, %v230_v30 }
 0x1ca   : > { %v236_v31 = vld [vmem:[#allocation3] sm:$0xff] }
 0x1cb   : > { %363 = vlog2.f32 %v236_v31 }
 0x1ce   : > { %v240_v35 = vld [vmem:[#allocation4] sm:$0xff] }
 0x1d5   : > { %v364_v32 = vpop.eup %363 }
 0x1d6   : > { %v238_v33 = vmul.f32 0.6931472, %v364_v32 }
 0x1d8   : > { %v239_v36 = vadd.f32 %v238_v33, %v235_v34 }
 0x1da   : > { %v241_v37 = vsub.f32 %v239_v36, %v240_v35 }
 0x1dc   : > { %242 = vst.msk [vmem:[%s178_s22] sm:$0xff] %vm183_vm0, %v241_v37 }
 0x1dd PF: > { %s12_s11 = sadd.s32 1, %s387_s11   ;;  %s462_s9 = smov %s383_s10 }
 0x1de   : > { %p9_p5 = scmp.ge.s32.totalorder %s12_s11, 5   ;;  %s463_s10 = smov %s465_s12 }
 0x1e0   :  { %11 = sbr.rel (!%p9_p5) target bundleno = 2 (0x2), region = 69 }

</bundles_post_ra>
